<compile_context>
chip_gen: v5e
topology: v5e:2x2
jax: 0.10.0
libtpu: 0.0.40
codegen_flags: <defaults>
</compile_context>

<pallas_src>
import functools
from collections import OrderedDict

import jax
import jax.numpy as jnp
import numpy as np
from jax.experimental import pallas as pl
from jax.experimental.pallas import tpu as pltpu

LANE = 128
SUBLANE = 8


def _round_up(x, m):
    return (x + m - 1) // m * m


# ---------------------------------------------------------------------------
# Fused kernel.  Ref layout:
#   inputs : x, [We_i, be_i, Wd_i, bd_i] * nb, (Wh, bh if head)
#   outputs: [enc_target_i, enc_output_i, dec_target_i, dec_output_i] * nb, output
# ---------------------------------------------------------------------------
def _fused_kernel(*refs, num_blocks: int, has_head: bool):
    n_in = 1 + 4 * num_blocks + (2 if has_head else 0)
    in_refs, out_refs = refs[:n_in], refs[n_in:]
    x_ref, w_refs = in_refs[0], in_refs[1:]

    def linear(x_bf16, w_ref, b_ref, relu):
        # bf16 x bf16 MXU matmul, f32 accumulate; bias-add + ReLU stay on the VPU.
        y = jnp.dot(x_bf16, w_ref[...], preferred_element_type=jnp.float32)
        y = y + b_ref[...]
        if relu:
            y = jnp.maximum(y, 0.0)
        return y

    x_cur = x_ref[...]                      # already bf16
    for i in range(num_blocks):
        We, be, Wd, bd = w_refs[4 * i:4 * i + 4]
        et_ref, eo_ref, dt_ref, do_ref = out_refs[4 * i:4 * i + 4]

        enc_output = linear(x_cur, We, be, relu=True)
        enc_output_b = enc_output.astype(jnp.bfloat16)
        dec_output = linear(enc_output_b, Wd, bd, relu=True)
        dec_output_b = dec_output.astype(jnp.bfloat16)
        enc_target = linear(dec_output_b, We, be, relu=True)
        enc_target_b = enc_target.astype(jnp.bfloat16)
        dec_target = linear(enc_target_b, Wd, bd, relu=True)

        et_ref[...] = enc_target.astype(et_ref.dtype)
        eo_ref[...] = enc_output.astype(eo_ref.dtype)
        dt_ref[...] = dec_target.astype(dt_ref.dtype)
        do_ref[...] = dec_output.astype(do_ref.dtype)

        x_cur = enc_output_b                # next block consumes enc_output

    # x = x.detach(); neck = nn.Identity(); head.
    # TODO(synk): .detach() only affects autodiff; forward values are unchanged.
    out_ref = out_refs[4 * num_blocks]
    if has_head:
        Wh, bh = w_refs[4 * num_blocks:4 * num_blocks + 2]
        out_ref[...] = linear(x_cur, Wh, bh, relu=False).astype(out_ref.dtype)
    else:
        out_ref[...] = x_cur.astype(out_ref.dtype)


# ---------------------------------------------------------------------------
# Wrapper: padding, specs, single pallas_call, un-padding.
# ---------------------------------------------------------------------------
def tourbillon_base_forward(x, block_params, head_params, classes):
    """Mirrors TourbillonBase.forward(); returns OrderedDict of all block
    intermediates plus the final head output."""
    M, d_in = x.shape
    num_blocks = len(block_params)
    has_head = classes > 0

    dims = [d_in] + [p["We"].shape[1] for p in block_params]
    dpad = [_round_up(d, LANE) for d in dims]
    cpad = _round_up(classes, LANE) if has_head else dpad[-1]

    M8 = _round_up(M, SUBLANE)
    TM = M8 if M8 <= 512 else 512           # row tile; keeps VMEM bounded as batch grows
    M_pad = _round_up(M8, TM)
    grid = (M_pad // TM,)

    def pad_w(w, rp, cp):                   # weights stored lane-dense, bf16, up front
        out = jnp.zeros((rp, cp), jnp.bfloat16)
        return out.at[:w.shape[0], :w.shape[1]].set(w.astype(jnp.bfloat16))

    def pad_b(b, cp):                       # bias stored once as (1, N) f32
        out = jnp.zeros((1, cp), jnp.float32)
        return out.at[0, :b.shape[0]].set(b.astype(jnp.float32))

    x_pad = jnp.zeros((M_pad, dpad[0]), jnp.bfloat16)
    x_pad = x_pad.at[:M, :d_in].set(x.astype(jnp.bfloat16))

    def row_spec(dim):
        return pl.BlockSpec((TM, dim), lambda i: (i, 0))

    def full_spec(shape):
        return pl.BlockSpec(shape, lambda i: (0, 0))

    inputs = [x_pad]
    in_specs = [row_spec(dpad[0])]
    for i, p in enumerate(block_params):
        di, dh = dpad[i], dpad[i + 1]
        inputs += [pad_w(p["We"], di, dh), pad_b(p["be"], dh),
                   pad_w(p["Wd"], dh, di), pad_b(p["bd"], di)]
        in_specs += [full_spec((di, dh)), full_spec((1, dh)),
                     full_spec((dh, di)), full_spec((1, di))]
    if has_head:
        inputs += [pad_w(head_params["W"], dpad[-1], cpad),
                   pad_b(head_params["b"], cpad)]
        in_specs += [full_spec((dpad[-1], cpad)), full_spec((1, cpad))]

    out_shapes, out_specs, out_real = [], [], []
    for i in range(num_blocks):
        di, dh = dpad[i], dpad[i + 1]
        ri, rh = dims[i], dims[i + 1]
        # order: enc_target, enc_output, dec_target, dec_output
        for dim_p, dim_r in ((dh, rh), (dh, rh), (di, ri), (di, ri)):
            out_shapes.append(jax.ShapeDtypeStruct((M_pad, dim_p), jnp.float32))
            out_specs.append(row_spec(dim_p))
            out_real.append(dim_r)
    out_shapes.append(jax.ShapeDtypeStruct((M_pad, cpad), jnp.float32))
    out_specs.append(row_spec(cpad))
    out_real.append(classes if has_head else dims[-1])

    kernel = functools.partial(_fused_kernel, num_blocks=num_blocks,
                               has_head=has_head)
    results = pl.pallas_call(
        kernel,
        out_shape=tuple(out_shapes),
        grid=grid,
        in_specs=in_specs,
        out_specs=tuple(out_specs),
        compiler_params=pltpu.CompilerParams(
            dimension_semantics=("parallel",)),
    )(*inputs)

    outputs = OrderedDict()
    names = ("enc_target", "enc_output", "dec_target", "dec_output")
    for i in range(num_blocks):
        for j, name in enumerate(names):
            outputs[f"{name}_{i}"] = results[4 * i + j][:M, :out_real[4 * i + j]]
    outputs["output"] = results[-1][:M, :out_real[-1]]
    return outputs


# ---------------------------------------------------------------------------
# Deterministic parameter init + pure-JAX reference (same bf16/f32 scheme)
# ---------------------------------------------------------------------------
def xavier_uniform(key, shape):
    fan_in, fan_out = shape
    limit = float(np.sqrt(6.0 / (fan_in + fan_out)))
    return jax.random.uniform(key, shape, jnp.float32, -limit, limit)


def init_block_params(key, d_in, d_hidden):
    k1, k2, k3, k4 = jax.random.split(key, 4)
    return {
        "We": xavier_uniform(k1, (d_in, d_hidden)),
        "be": jax.random.normal(k2, (d_hidden,), jnp.float32) * 0.01,
        "Wd": xavier_uniform(k3, (d_hidden, d_in)),
        "bd": jax.random.normal(k4, (d_in,), jnp.float32) * 0.01,
    }


def init_head_params(key, d_in, classes):
    k1, _ = jax.random.split(key)
    return {"W": xavier_uniform(k1, (d_in, classes)),
            "b": jnp.zeros((classes,), jnp.float32)}


def reference_forward(x, block_params, head_params, classes):
    def lin(a, W, b, relu):
        y = jnp.dot(a.astype(jnp.bfloat16), W.astype(jnp.bfloat16),
                    preferred_element_type=jnp.float32) + b.astype(jnp.float32)
        return jnp.maximum(y, 0.0) if relu else y

    outputs = OrderedDict()
    cur = x
    for i, p in enumerate(block_params):
        eo = lin(cur, p["We"], p["be"], True)
        do = lin(eo, p["Wd"], p["bd"], True)
        et = lin(do, p["We"], p["be"], True)
        dt = lin(et, p["Wd"], p["bd"], True)
        outputs[f"enc_target_{i}"] = et
        outputs[f"enc_output_{i}"] = eo
        outputs[f"dec_target_{i}"] = dt
        outputs[f"dec_output_{i}"] = do
        cur = eo
    cur = jax.lax.stop_gradient(cur)
    if classes > 0:
        cur = lin(cur, head_params["W"], head_params["b"], False)
    outputs["output"] = cur
    return outputs


# ---------------------------------------------------------------------------
# Demo
# ---------------------------------------------------------------------------
if __name__ == "__main__":
    key = jax.random.PRNGKey(0)
    k_x, k_b0, k_b1, k_head = jax.random.split(key, 4)

    batch = 8
    d_in = 32
    hidden_sizes = [32, 16]          # two blocks; last_hidden_size = 16
    classes = 10

    x = jax.random.normal(k_x, (batch, d_in), jnp.float32)

    block_params = [
        init_block_params(k_b0, d_in, hidden_sizes[0]),
        init_block_params(k_b1, hidden_sizes[0], hidden_sizes[1]),
    ]
    head_params = init_head_params(k_head, hidden_sizes[-1], classes)

    outputs = tourbillon_base_forward(x, block_params, head_params, classes)
    outputs = jax.tree_util.tree_map(jax.block_until_ready, outputs)

    # shape / key sanity checks
    assert list(outputs.keys()) == [
        "enc_target_0", "enc_output_0", "dec_target_0", "dec_output_0",
        "enc_target_1", "enc_output_1", "dec_target_1", "dec_output_1",
        "output",
    ]
    assert outputs["enc_output_0"].shape == (batch, hidden_sizes[0])
    assert outputs["dec_output_0"].shape == (batch, d_in)
    assert outputs["enc_output_1"].shape == (batch, hidden_sizes[1])
    assert outputs["dec_output_1"].shape == (batch, hidden_sizes[0])
    assert outputs["output"].shape == (batch, classes)
    assert all(bool(jnp.all(jnp.isfinite(v))) for v in outputs.values())

    # numeric check vs pure-JAX reference using the same bf16-in / f32-acc scheme
    ref = reference_forward(x, block_params, head_params, classes)
    for k in outputs:
        np.testing.assert_allclose(np.asarray(outputs[k]), np.asarray(ref[k]),
                                   rtol=2e-2, atol=2e-2)

    print("KERNEL_OK")
</pallas_src>

<mosaic_0001>
module attributes {stable_mosaic.version = 11 : i64} {
  func.func @_fused_kernel(%arg0: i32, %arg1: memref<8x128xbf16, #tpu.memory_space<vmem>>, %arg2: memref<128x128xbf16, #tpu.memory_space<vmem>>, %arg3: memref<1x128xf32, #tpu.memory_space<vmem>>, %arg4: memref<128x128xbf16, #tpu.memory_space<vmem>>, %arg5: memref<1x128xf32, #tpu.memory_space<vmem>>, %arg6: memref<128x128xbf16, #tpu.memory_space<vmem>>, %arg7: memref<1x128xf32, #tpu.memory_space<vmem>>, %arg8: memref<128x128xbf16, #tpu.memory_space<vmem>>, %arg9: memref<1x128xf32, #tpu.memory_space<vmem>>, %arg10: memref<128x128xbf16, #tpu.memory_space<vmem>>, %arg11: memref<1x128xf32, #tpu.memory_space<vmem>>, %arg12: memref<8x128xf32, #tpu.memory_space<vmem>>, %arg13: memref<8x128xf32, #tpu.memory_space<vmem>>, %arg14: memref<8x128xf32, #tpu.memory_space<vmem>>, %arg15: memref<8x128xf32, #tpu.memory_space<vmem>>, %arg16: memref<8x128xf32, #tpu.memory_space<vmem>>, %arg17: memref<8x128xf32, #tpu.memory_space<vmem>>, %arg18: memref<8x128xf32, #tpu.memory_space<vmem>>, %arg19: memref<8x128xf32, #tpu.memory_space<vmem>>, %arg20: memref<8x128xf32, #tpu.memory_space<vmem>>) attributes {dimension_semantics = [#tpu.dimension_semantics<parallel>], iteration_bounds = array<i64: 1>, scalar_prefetch = 0 : i64, scratch_operands = 0 : i64, tpu.core_type = #tpu.core_type<tc>, window_params = [{transform_indices = @transform_0, window_bounds = array<i64: 8, 128>}, {pipeline_mode = #tpu.pipeline_mode<synchronous>, transform_indices = @transform_1, window_bounds = array<i64: 128, 128>}, {pipeline_mode = #tpu.pipeline_mode<synchronous>, transform_indices = @transform_2, window_bounds = array<i64: 1, 128>}, {pipeline_mode = #tpu.pipeline_mode<synchronous>, transform_indices = @transform_3, window_bounds = array<i64: 128, 128>}, {pipeline_mode = #tpu.pipeline_mode<synchronous>, transform_indices = @transform_4, window_bounds = array<i64: 1, 128>}, {pipeline_mode = #tpu.pipeline_mode<synchronous>, transform_indices = @transform_5, window_bounds = array<i64: 128, 128>}, {pipeline_mode = #tpu.pipeline_mode<synchronous>, transform_indices = @transform_6, window_bounds = array<i64: 1, 128>}, {pipeline_mode = #tpu.pipeline_mode<synchronous>, transform_indices = @transform_7, window_bounds = array<i64: 128, 128>}, {pipeline_mode = #tpu.pipeline_mode<synchronous>, transform_indices = @transform_8, window_bounds = array<i64: 1, 128>}, {pipeline_mode = #tpu.pipeline_mode<synchronous>, transform_indices = @transform_9, window_bounds = array<i64: 128, 128>}, {pipeline_mode = #tpu.pipeline_mode<synchronous>, transform_indices = @transform_10, window_bounds = array<i64: 1, 128>}, {transform_indices = @transform_11, window_bounds = array<i64: 8, 128>}, {transform_indices = @transform_12, window_bounds = array<i64: 8, 128>}, {transform_indices = @transform_13, window_bounds = array<i64: 8, 128>}, {transform_indices = @transform_14, window_bounds = array<i64: 8, 128>}, {transform_indices = @transform_15, window_bounds = array<i64: 8, 128>}, {transform_indices = @transform_16, window_bounds = array<i64: 8, 128>}, {transform_indices = @transform_17, window_bounds = array<i64: 8, 128>}, {transform_indices = @transform_18, window_bounds = array<i64: 8, 128>}, {transform_indices = @transform_19, window_bounds = array<i64: 8, 128>}]} {
    %c0 = arith.constant 0 : index
    %c0_0 = arith.constant 0 : index
    %0 = vector.load %arg1[%c0, %c0_0] : memref<8x128xbf16, #tpu.memory_space<vmem>>, vector<8x128xbf16>
    %c0_1 = arith.constant 0 : index
    %c0_2 = arith.constant 0 : index
    %1 = vector.load %arg2[%c0_1, %c0_2] : memref<128x128xbf16, #tpu.memory_space<vmem>>, vector<128x128xbf16>
    %cst = arith.constant dense<0.000000e+00> : vector<8x128xf32>
    %2 = tpu.matmul %0, %1, %cst {dimension_numbers = #tpu.dot_dimension_numbers<[1], [0], [0], [1], [0, 0, 1, 1], [], []>} : vector<8x128xbf16>, vector<128x128xbf16>, vector<8x128xf32> -> vector<8x128xf32>
    %c0_3 = arith.constant 0 : index
    %c0_4 = arith.constant 0 : index
    %3 = vector.load %arg3[%c0_3, %c0_4] : memref<1x128xf32, #tpu.memory_space<vmem>>, vector<1x128xf32>
    %4 = vector.broadcast %3 : vector<1x128xf32> to vector<8x128xf32>
    %5 = arith.addf %2, %4 : vector<8x128xf32>
    %cst_5 = arith.constant 0.000000e+00 : f32
    %6 = vector.broadcast %cst_5 : f32 to vector<8x128xf32>
    %7 = arith.maximumf %5, %6 : vector<8x128xf32>
    %8 = arith.truncf %7 : vector<8x128xf32> to vector<8x128xbf16>
    %c0_6 = arith.constant 0 : index
    %c0_7 = arith.constant 0 : index
    %9 = vector.load %arg4[%c0_6, %c0_7] : memref<128x128xbf16, #tpu.memory_space<vmem>>, vector<128x128xbf16>
    %cst_8 = arith.constant dense<0.000000e+00> : vector<8x128xf32>
    %10 = tpu.matmul %8, %9, %cst_8 {dimension_numbers = #tpu.dot_dimension_numbers<[1], [0], [0], [1], [0, 0, 1, 1], [], []>} : vector<8x128xbf16>, vector<128x128xbf16>, vector<8x128xf32> -> vector<8x128xf32>
    %c0_9 = arith.constant 0 : index
    %c0_10 = arith.constant 0 : index
    %11 = vector.load %arg5[%c0_9, %c0_10] : memref<1x128xf32, #tpu.memory_space<vmem>>, vector<1x128xf32>
    %12 = vector.broadcast %11 : vector<1x128xf32> to vector<8x128xf32>
    %13 = arith.addf %10, %12 : vector<8x128xf32>
    %cst_11 = arith.constant 0.000000e+00 : f32
    %14 = vector.broadcast %cst_11 : f32 to vector<8x128xf32>
    %15 = arith.maximumf %13, %14 : vector<8x128xf32>
    %16 = arith.truncf %15 : vector<8x128xf32> to vector<8x128xbf16>
    %c0_12 = arith.constant 0 : index
    %c0_13 = arith.constant 0 : index
    %17 = vector.load %arg2[%c0_12, %c0_13] : memref<128x128xbf16, #tpu.memory_space<vmem>>, vector<128x128xbf16>
    %cst_14 = arith.constant dense<0.000000e+00> : vector<8x128xf32>
    %18 = tpu.matmul %16, %17, %cst_14 {dimension_numbers = #tpu.dot_dimension_numbers<[1], [0], [0], [1], [0, 0, 1, 1], [], []>} : vector<8x128xbf16>, vector<128x128xbf16>, vector<8x128xf32> -> vector<8x128xf32>
    %c0_15 = arith.constant 0 : index
    %c0_16 = arith.constant 0 : index
    %19 = vector.load %arg3[%c0_15, %c0_16] : memref<1x128xf32, #tpu.memory_space<vmem>>, vector<1x128xf32>
    %20 = vector.broadcast %19 : vector<1x128xf32> to vector<8x128xf32>
    %21 = arith.addf %18, %20 : vector<8x128xf32>
    %cst_17 = arith.constant 0.000000e+00 : f32
    %22 = vector.broadcast %cst_17 : f32 to vector<8x128xf32>
    %23 = arith.maximumf %21, %22 : vector<8x128xf32>
    %24 = arith.truncf %23 : vector<8x128xf32> to vector<8x128xbf16>
    %c0_18 = arith.constant 0 : index
    %c0_19 = arith.constant 0 : index
    %25 = vector.load %arg4[%c0_18, %c0_19] : memref<128x128xbf16, #tpu.memory_space<vmem>>, vector<128x128xbf16>
    %cst_20 = arith.constant dense<0.000000e+00> : vector<8x128xf32>
    %26 = tpu.matmul %24, %25, %cst_20 {dimension_numbers = #tpu.dot_dimension_numbers<[1], [0], [0], [1], [0, 0, 1, 1], [], []>} : vector<8x128xbf16>, vector<128x128xbf16>, vector<8x128xf32> -> vector<8x128xf32>
    %c0_21 = arith.constant 0 : index
    %c0_22 = arith.constant 0 : index
    %27 = vector.load %arg5[%c0_21, %c0_22] : memref<1x128xf32, #tpu.memory_space<vmem>>, vector<1x128xf32>
    %28 = vector.broadcast %27 : vector<1x128xf32> to vector<8x128xf32>
    %29 = arith.addf %26, %28 : vector<8x128xf32>
    %cst_23 = arith.constant 0.000000e+00 : f32
    %30 = vector.broadcast %cst_23 : f32 to vector<8x128xf32>
    %31 = arith.maximumf %29, %30 : vector<8x128xf32>
    %c0_24 = arith.constant 0 : index
    %c0_25 = arith.constant 0 : index
    %32 = vector.load %arg12[%c0_24, %c0_25] : memref<8x128xf32, #tpu.memory_space<vmem>>, vector<8x128xf32>
    tpu.vector_store %arg12[%c0_24, %c0_25], %23 {strides = array<i32>} : memref<8x128xf32, #tpu.memory_space<vmem>>, vector<8x128xf32>,
    %c0_26 = arith.constant 0 : index
    %c0_27 = arith.constant 0 : index
    %33 = vector.load %arg13[%c0_26, %c0_27] : memref<8x128xf32, #tpu.memory_space<vmem>>, vector<8x128xf32>
    tpu.vector_store %arg13[%c0_26, %c0_27], %7 {strides = array<i32>} : memref<8x128xf32, #tpu.memory_space<vmem>>, vector<8x128xf32>,
    %c0_28 = arith.constant 0 : index
    %c0_29 = arith.constant 0 : index
    %34 = vector.load %arg14[%c0_28, %c0_29] : memref<8x128xf32, #tpu.memory_space<vmem>>, vector<8x128xf32>
    tpu.vector_store %arg14[%c0_28, %c0_29], %31 {strides = array<i32>} : memref<8x128xf32, #tpu.memory_space<vmem>>, vector<8x128xf32>,
    %c0_30 = arith.constant 0 : index
    %c0_31 = arith.constant 0 : index
    %35 = vector.load %arg15[%c0_30, %c0_31] : memref<8x128xf32, #tpu.memory_space<vmem>>, vector<8x128xf32>
    tpu.vector_store %arg15[%c0_30, %c0_31], %15 {strides = array<i32>} : memref<8x128xf32, #tpu.memory_space<vmem>>, vector<8x128xf32>,
    %c0_32 = arith.constant 0 : index
    %c0_33 = arith.constant 0 : index
    %36 = vector.load %arg6[%c0_32, %c0_33] : memref<128x128xbf16, #tpu.memory_space<vmem>>, vector<128x128xbf16>
    %cst_34 = arith.constant dense<0.000000e+00> : vector<8x128xf32>
    %37 = tpu.matmul %8, %36, %cst_34 {dimension_numbers = #tpu.dot_dimension_numbers<[1], [0], [0], [1], [0, 0, 1, 1], [], []>} : vector<8x128xbf16>, vector<128x128xbf16>, vector<8x128xf32> -> vector<8x128xf32>
    %c0_35 = arith.constant 0 : index
    %c0_36 = arith.constant 0 : index
    %38 = vector.load %arg7[%c0_35, %c0_36] : memref<1x128xf32, #tpu.memory_space<vmem>>, vector<1x128xf32>
    %39 = vector.broadcast %38 : vector<1x128xf32> to vector<8x128xf32>
    %40 = arith.addf %37, %39 : vector<8x128xf32>
    %cst_37 = arith.constant 0.000000e+00 : f32
    %41 = vector.broadcast %cst_37 : f32 to vector<8x128xf32>
    %42 = arith.maximumf %40, %41 : vector<8x128xf32>
    %43 = arith.truncf %42 : vector<8x128xf32> to vector<8x128xbf16>
    %c0_38 = arith.constant 0 : index
    %c0_39 = arith.constant 0 : index
    %44 = vector.load %arg8[%c0_38, %c0_39] : memref<128x128xbf16, #tpu.memory_space<vmem>>, vector<128x128xbf16>
    %cst_40 = arith.constant dense<0.000000e+00> : vector<8x128xf32>
    %45 = tpu.matmul %43, %44, %cst_40 {dimension_numbers = #tpu.dot_dimension_numbers<[1], [0], [0], [1], [0, 0, 1, 1], [], []>} : vector<8x128xbf16>, vector<128x128xbf16>, vector<8x128xf32> -> vector<8x128xf32>
    %c0_41 = arith.constant 0 : index
    %c0_42 = arith.constant 0 : index
    %46 = vector.load %arg9[%c0_41, %c0_42] : memref<1x128xf32, #tpu.memory_space<vmem>>, vector<1x128xf32>
    %47 = vector.broadcast %46 : vector<1x128xf32> to vector<8x128xf32>
    %48 = arith.addf %45, %47 : vector<8x128xf32>
    %cst_43 = arith.constant 0.000000e+00 : f32
    %49 = vector.broadcast %cst_43 : f32 to vector<8x128xf32>
    %50 = arith.maximumf %48, %49 : vector<8x128xf32>
    %51 = arith.truncf %50 : vector<8x128xf32> to vector<8x128xbf16>
    %c0_44 = arith.constant 0 : index
    %c0_45 = arith.constant 0 : index
    %52 = vector.load %arg6[%c0_44, %c0_45] : memref<128x128xbf16, #tpu.memory_space<vmem>>, vector<128x128xbf16>
    %cst_46 = arith.constant dense<0.000000e+00> : vector<8x128xf32>
    %53 = tpu.matmul %51, %52, %cst_46 {dimension_numbers = #tpu.dot_dimension_numbers<[1], [0], [0], [1], [0, 0, 1, 1], [], []>} : vector<8x128xbf16>, vector<128x128xbf16>, vector<8x128xf32> -> vector<8x128xf32>
    %c0_47 = arith.constant 0 : index
    %c0_48 = arith.constant 0 : index
    %54 = vector.load %arg7[%c0_47, %c0_48] : memref<1x128xf32, #tpu.memory_space<vmem>>, vector<1x128xf32>
    %55 = vector.broadcast %54 : vector<1x128xf32> to vector<8x128xf32>
    %56 = arith.addf %53, %55 : vector<8x128xf32>
    %cst_49 = arith.constant 0.000000e+00 : f32
    %57 = vector.broadcast %cst_49 : f32 to vector<8x128xf32>
    %58 = arith.maximumf %56, %57 : vector<8x128xf32>
    %59 = arith.truncf %58 : vector<8x128xf32> to vector<8x128xbf16>
    %c0_50 = arith.constant 0 : index
    %c0_51 = arith.constant 0 : index
    %60 = vector.load %arg8[%c0_50, %c0_51] : memref<128x128xbf16, #tpu.memory_space<vmem>>, vector<128x128xbf16>
    %cst_52 = arith.constant dense<0.000000e+00> : vector<8x128xf32>
    %61 = tpu.matmul %59, %60, %cst_52 {dimension_numbers = #tpu.dot_dimension_numbers<[1], [0], [0], [1], [0, 0, 1, 1], [], []>} : vector<8x128xbf16>, vector<128x128xbf16>, vector<8x128xf32> -> vector<8x128xf32>
    %c0_53 = arith.constant 0 : index
    %c0_54 = arith.constant 0 : index
    %62 = vector.load %arg9[%c0_53, %c0_54] : memref<1x128xf32, #tpu.memory_space<vmem>>, vector<1x128xf32>
    %63 = vector.broadcast %62 : vector<1x128xf32> to vector<8x128xf32>
    %64 = arith.addf %61, %63 : vector<8x128xf32>
    %cst_55 = arith.constant 0.000000e+00 : f32
    %65 = vector.broadcast %cst_55 : f32 to vector<8x128xf32>
    %66 = arith.maximumf %64, %65 : vector<8x128xf32>
    %c0_56 = arith.constant 0 : index
    %c0_57 = arith.constant 0 : index
    %67 = vector.load %arg16[%c0_56, %c0_57] : memref<8x128xf32, #tpu.memory_space<vmem>>, vector<8x128xf32>
    tpu.vector_store %arg16[%c0_56, %c0_57], %58 {strides = array<i32>} : memref<8x128xf32, #tpu.memory_space<vmem>>, vector<8x128xf32>,
    %c0_58 = arith.constant 0 : index
    %c0_59 = arith.constant 0 : index
    %68 = vector.load %arg17[%c0_58, %c0_59] : memref<8x128xf32, #tpu.memory_space<vmem>>, vector<8x128xf32>
    tpu.vector_store %arg17[%c0_58, %c0_59], %42 {strides = array<i32>} : memref<8x128xf32, #tpu.memory_space<vmem>>, vector<8x128xf32>,
    %c0_60 = arith.constant 0 : index
    %c0_61 = arith.constant 0 : index
    %69 = vector.load %arg18[%c0_60, %c0_61] : memref<8x128xf32, #tpu.memory_space<vmem>>, vector<8x128xf32>
    tpu.vector_store %arg18[%c0_60, %c0_61], %66 {strides = array<i32>} : memref<8x128xf32, #tpu.memory_space<vmem>>, vector<8x128xf32>,
    %c0_62 = arith.constant 0 : index
    %c0_63 = arith.constant 0 : index
    %70 = vector.load %arg19[%c0_62, %c0_63] : memref<8x128xf32, #tpu.memory_space<vmem>>, vector<8x128xf32>
    tpu.vector_store %arg19[%c0_62, %c0_63], %50 {strides = array<i32>} : memref<8x128xf32, #tpu.memory_space<vmem>>, vector<8x128xf32>,
    %c0_64 = arith.constant 0 : index
    %c0_65 = arith.constant 0 : index
    %71 = vector.load %arg10[%c0_64, %c0_65] : memref<128x128xbf16, #tpu.memory_space<vmem>>, vector<128x128xbf16>
    %cst_66 = arith.constant dense<0.000000e+00> : vector<8x128xf32>
    %72 = tpu.matmul %43, %71, %cst_66 {dimension_numbers = #tpu.dot_dimension_numbers<[1], [0], [0], [1], [0, 0, 1, 1], [], []>} : vector<8x128xbf16>, vector<128x128xbf16>, vector<8x128xf32> -> vector<8x128xf32>
    %c0_67 = arith.constant 0 : index
    %c0_68 = arith.constant 0 : index
    %73 = vector.load %arg11[%c0_67, %c0_68] : memref<1x128xf32, #tpu.memory_space<vmem>>, vector<1x128xf32>
    %74 = vector.broadcast %73 : vector<1x128xf32> to vector<8x128xf32>
    %75 = arith.addf %72, %74 : vector<8x128xf32>
    %c0_69 = arith.constant 0 : index
    %c0_70 = arith.constant 0 : index
    %76 = vector.load %arg20[%c0_69, %c0_70] : memref<8x128xf32, #tpu.memory_space<vmem>>, vector<8x128xf32>
    tpu.vector_store %arg20[%c0_69, %c0_70], %75 {strides = array<i32>} : memref<8x128xf32, #tpu.memory_space<vmem>>, vector<8x128xf32>,
    return
  }
  func.func @transform_0(%arg0: i32) -> (i32, i32) {
    %c0_i32 = arith.constant 0 : i32
    %c0_i32_0 = arith.constant 0 : i32
    return %arg0, %c0_i32 : i32, i32
  }
  func.func @transform_1(%arg0: i32) -> (i32, i32) {
    %c0_i32 = arith.constant 0 : i32
    %c0_i32_0 = arith.constant 0 : i32
    %c0_i32_1 = arith.constant 0 : i32
    return %c0_i32, %c0_i32_0 : i32, i32
  }
  func.func @transform_2(%arg0: i32) -> (i32, i32) {
    %c0_i32 = arith.constant 0 : i32
    %c0_i32_0 = arith.constant 0 : i32
    %c0_i32_1 = arith.constant 0 : i32
    return %c0_i32, %c0_i32_0 : i32, i32
  }
  func.func @transform_3(%arg0: i32) -> (i32, i32) {
    %c0_i32 = arith.constant 0 : i32
    %c0_i32_0 = arith.constant 0 : i32
    %c0_i32_1 = arith.constant 0 : i32
    return %c0_i32, %c0_i32_0 : i32, i32
  }
  func.func @transform_4(%arg0: i32) -> (i32, i32) {
    %c0_i32 = arith.constant 0 : i32
    %c0_i32_0 = arith.constant 0 : i32
    %c0_i32_1 = arith.constant 0 : i32
    return %c0_i32, %c0_i32_0 : i32, i32
  }
  func.func @transform_5(%arg0: i32) -> (i32, i32) {
    %c0_i32 = arith.constant 0 : i32
    %c0_i32_0 = arith.constant 0 : i32
    %c0_i32_1 = arith.constant 0 : i32
    return %c0_i32, %c0_i32_0 : i32, i32
  }
  func.func @transform_6(%arg0: i32) -> (i32, i32) {
    %c0_i32 = arith.constant 0 : i32
    %c0_i32_0 = arith.constant 0 : i32
    %c0_i32_1 = arith.constant 0 : i32
    return %c0_i32, %c0_i32_0 : i32, i32
  }
  func.func @transform_7(%arg0: i32) -> (i32, i32) {
    %c0_i32 = arith.constant 0 : i32
    %c0_i32_0 = arith.constant 0 : i32
    %c0_i32_1 = arith.constant 0 : i32
    return %c0_i32, %c0_i32_0 : i32, i32
  }
  func.func @transform_8(%arg0: i32) -> (i32, i32) {
    %c0_i32 = arith.constant 0 : i32
    %c0_i32_0 = arith.constant 0 : i32
    %c0_i32_1 = arith.constant 0 : i32
    return %c0_i32, %c0_i32_0 : i32, i32
  }
  func.func @transform_9(%arg0: i32) -> (i32, i32) {
    %c0_i32 = arith.constant 0 : i32
    %c0_i32_0 = arith.constant 0 : i32
    %c0_i32_1 = arith.constant 0 : i32
    return %c0_i32, %c0_i32_0 : i32, i32
  }
  func.func @transform_10(%arg0: i32) -> (i32, i32) {
    %c0_i32 = arith.constant 0 : i32
    %c0_i32_0 = arith.constant 0 : i32
    %c0_i32_1 = arith.constant 0 : i32
    return %c0_i32, %c0_i32_0 : i32, i32
  }
  func.func @transform_11(%arg0: i32) -> (i32, i32) {
    %c0_i32 = arith.constant 0 : i32
    %c0_i32_0 = arith.constant 0 : i32
    return %arg0, %c0_i32 : i32, i32
  }
  func.func @transform_12(%arg0: i32) -> (i32, i32) {
    %c0_i32 = arith.constant 0 : i32
    %c0_i32_0 = arith.constant 0 : i32
    return %arg0, %c0_i32 : i32, i32
  }
  func.func @transform_13(%arg0: i32) -> (i32, i32) {
    %c0_i32 = arith.constant 0 : i32
    %c0_i32_0 = arith.constant 0 : i32
    return %arg0, %c0_i32 : i32, i32
  }
  func.func @transform_14(%arg0: i32) -> (i32, i32) {
    %c0_i32 = arith.constant 0 : i32
    %c0_i32_0 = arith.constant 0 : i32
    return %arg0, %c0_i32 : i32, i32
  }
  func.func @transform_15(%arg0: i32) -> (i32, i32) {
    %c0_i32 = arith.constant 0 : i32
    %c0_i32_0 = arith.constant 0 : i32
    return %arg0, %c0_i32 : i32, i32
  }
  func.func @transform_16(%arg0: i32) -> (i32, i32) {
    %c0_i32 = arith.constant 0 : i32
    %c0_i32_0 = arith.constant 0 : i32
    return %arg0, %c0_i32 : i32, i32
  }
  func.func @transform_17(%arg0: i32) -> (i32, i32) {
    %c0_i32 = arith.constant 0 : i32
    %c0_i32_0 = arith.constant 0 : i32
    return %arg0, %c0_i32 : i32, i32
  }
  func.func @transform_18(%arg0: i32) -> (i32, i32) {
    %c0_i32 = arith.constant 0 : i32
    %c0_i32_0 = arith.constant 0 : i32
    return %arg0, %c0_i32 : i32, i32
  }
  func.func @transform_19(%arg0: i32) -> (i32, i32) {
    %c0_i32 = arith.constant 0 : i32
    %c0_i32_0 = arith.constant 0 : i32
    return %arg0, %c0_i32 : i32, i32
  }
}

</mosaic_0001>

<bundles_post_ra>
// kernel: tpu_custom_call.1
= control target key start
LH: loop header
LB: loop body
LE: loop exit
PB: predicated region body
PF: predicated region fallthrough
CT: control target
= control target key end

     0   :  { %s1565_s0 = inlined_call_operand.hbm [shape: bf16[8,128], index: 0, kind: input, shape index: {}]   ;;  %s1566_s1 = inlined_call_operand.hbm [shape: bf16[128,128], index: 1, kind: input, shape index: {}]   ;;  %s1567_s2 = inlined_call_operand.vmem [shape: f32[1,128], index: 2, kind: input, shape index: {}]   ;;  %s1568_s3 = inlined_call_operand.hbm [shape: bf16[128,128], index: 3, kind: input, shape index: {}]   ;;  %s1569_s4 = inlined_call_operand.vmem [shape: f32[1,128], index: 4, kind: input, shape index: {}]   ;;  %s1570_s5 = inlined_call_operand.hbm [shape: bf16[128,128], index: 5, kind: input, shape index: {}]   ;;  %s1571_s6 = inlined_call_operand.vmem [shape: f32[1,128], index: 6, kind: input, shape index: {}]   ;;  %s1572_s7 = inlined_call_operand.hbm [shape: bf16[128,128], index: 7, kind: input, shape index: {}]   ;;  %s1573_s8 = inlined_call_operand.vmem [shape: f32[1,128], index: 8, kind: input, shape index: {}]   ;;  %s1574_s9 = inlined_call_operand.hbm [shape: bf16[128,128], index: 9, kind: input, shape index: {}]   ;;  %s1575_s10 = inlined_call_operand.vmem [shape: f32[1,128], index: 10, kind: input, shape index: {}]   ;;  %s1576_s11 = inlined_call_operand.hbm [shape: f32[8,128], index: 11, kind: output, shape index: {0}]   ;;  %s1577_s12 = inlined_call_operand.hbm [shape: f32[8,128], index: 12, kind: output, shape index: {1}]   ;;  %s1578_s13 = inlined_call_operand.hbm [shape: f32[8,128], index: 13, kind: output, shape index: {2}]   ;;  %s1579_s14 = inlined_call_operand.hbm [shape: f32[8,128], index: 14, kind: output, shape index: {3}]   ;;  %s1580_s15 = inlined_call_operand.hbm [shape: f32[8,128], index: 15, kind: output, shape index: {4}]   ;;  %s1581_s16 = inlined_call_operand.hbm [shape: f32[8,128], index: 16, kind: output, shape index: {5}]   ;;  %s1582_s17 = inlined_call_operand.hbm [shape: f32[8,128], index: 17, kind: output, shape index: {6}]   ;;  %s1583_s18 = inlined_call_operand.hbm [shape: f32[8,128], index: 18, kind: output, shape index: {7}]   ;;  %s1584_s19 = inlined_call_operand.hbm [shape: f32[8,128], index: 19, kind: output, shape index: {8}]  }
   0x1   :  { %1585 = sst [smem:[#allocation35_spill]] %s1565_s0 }
   0x2   :  { %1586 = sst [smem:[#allocation36_spill]] %s1566_s1 }
   0x3   :  { %1587 = sst [smem:[#allocation37_spill]] %s1567_s2 }
   0x4   :  { %1588 = sst [smem:[#allocation38_spill]] %s1568_s3 }
   0x5   :  { %1589 = sst [smem:[#allocation39_spill]] %s1582_s17 }
   0x6   :  { %25 = vsyncpa [#allocation3], 0 }
   0x7   :  { %26 = vsyncpa [#allocation6], 0 }
   0x8   :  { %27 = vsyncpa [#allocation9], 0 }
   0x9   :  { %28 = vsyncpa [#allocation12], 0 }
   0xa   :  { %29 = vsyncpa [#allocation4], 0 }
   0xb   :  { %30 = vsyncpa [#allocation15], 0 }
   0xc   :  { %31 = vsyncpa [#allocation18], 0 }
   0xd   :  { %32 = vsyncpa [#allocation21], 0  ;;  %s1590_s20 = sld [smem:[#allocation36_spill]] }
  0x13   :  { %s49_s21 = sshll.u32 %s1590_s20, 4  ;;  %s50_s21 = int_to_ptr.hbm [resolvable:$true] %s49_s21 }
  0x14   :  { %33 = vsyncpa [#allocation24], 0  ;;  %s1369_s1 = smov [#allocation5]   ;;  %s79_s24 = sshll.u32 %s1570_s5, 4  ;;  %s80_s24 = int_to_ptr.hbm [resolvable:$true] %s79_s24 }
  0x15   :  { %s51_s22 = sshll.u32 %s1369_s1, 4  ;;  %s1370_s25 = smov 64   ;;  %s52_s22 = int_to_ptr.vmem [resolvable:$true] %s51_s22 }
  0x16   :  { %s1371_s3 = smov 4   ;;  %s1372_s26 = smov [#allocation8]  }
  0x17   :  { %57 = dma.hbm_to_vmem [thread:$0]  %s50_s21, 1024, %s52_s22, [#allocation6], %s1370_s25, %s1370_s25, %s1371_s3  }
  0x18   :  { %s81_s27 = sshll.u32 %s1372_s26, 4  ;;  %s1591_s0 = sld [smem:[#allocation35_spill]]  ;;  %s82_s27 = int_to_ptr.vmem [resolvable:$true] %s81_s27 }
  0x19   :  { %87 = dma.hbm_to_vmem [thread:$0]  %s80_s24, 1024, %s82_s27, [#allocation9], %s1370_s25, %s1370_s25, %s1371_s3  }
  0x1a   :  { %s1592_s1 = sld [smem:[#allocation38_spill]]  ;;  %s1373_s23 = smov [#allocation2]  }
  0x1b   :  { %s41_s17 = sshll.u32 %s1373_s23, 4  ;;  %s1374_s21 = smov [#allocation7]   ;;  %s42_s17 = int_to_ptr.vmem [resolvable:$true] %s41_s17 }
  0x1c   :  { %s66_s22 = sshll.u32 %s1374_s21, 4  ;;  %s94_s29 = sshll.u32 %s1572_s7, 4  ;;  %s67_s22 = int_to_ptr.vmem [resolvable:$true] %s66_s22  ;;  %s95_s29 = int_to_ptr.hbm [resolvable:$true] %s94_s29 }
  0x1d   :  { %s1375_s5 = smov [#allocation10]  }
  0x1e   :  { %s39_s30 = sshll.u32 %s1591_s0, 4  ;;  %s109_s0 = sshll.u32 %s1574_s9, 4  ;;  %s40_s30 = int_to_ptr.hbm [resolvable:$true] %s39_s30  ;;  %s110_s0 = int_to_ptr.hbm [resolvable:$true] %s109_s0 }
  0x1f   :  { %44 = dma.hbm_to_vmem [thread:$0]  %s40_s30, 64, %s42_s17, [#allocation3]  }
  0x20   :  { %s64_s2 = sshll.u32 %s1592_s1, 4  ;;  %s96_s20 = sshll.u32 %s1375_s5, 4  ;;  %s65_s2 = int_to_ptr.hbm [resolvable:$true] %s64_s2  ;;  %s97_s20 = int_to_ptr.vmem [resolvable:$true] %s96_s20 }
  0x21   :  { %72 = dma.hbm_to_vmem [thread:$0]  %s65_s2, 1024, %s67_s22, [#allocation6], %s1370_s25, %s1370_s25, %s1371_s3  }
  0x22   :  { %102 = dma.hbm_to_vmem [thread:$0]  %s95_s29, 1024, %s97_s20, [#allocation9], %s1370_s25, %s1370_s25, %s1371_s3  }
  0x23   :  { %s1376_s17 = smov [#allocation11]  }
  0x24   :  { %s111_s7 = sshll.u32 %s1376_s17, 4  ;;  %s112_s7 = int_to_ptr.vmem [resolvable:$true] %s111_s7 }
  0x25   :  { %117 = dma.hbm_to_vmem [thread:$0]  %s110_s0, 1024, %s112_s7, [#allocation12], %s1370_s25, %s1370_s25, %s1371_s3  }
  0x26   :  { %1351 = dma.done.wait [#allocation3], 64  }
  0x27   :  { %1352 = vsyncadd [#allocation3], 4294967232 }
  0x28   :  { %1353 = dma.done.wait [#allocation6], 2048  }
  0x29   :  { %1354 = vsyncadd [#allocation6], 4294965248 }
  0x2a   :  { %1355 = dma.done.wait [#allocation9], 2048  }
  0x2b   :  { %1356 = vsyncadd [#allocation9], 4294965248 }
  0x2c   :  { %1357 = dma.done.wait [#allocation12], 1024  }
  0x2d   :  { %1358 = vsyncadd [#allocation12], 4294966272  ;;  %v936_v0 = vld [vmem:[#allocation5 + $0x38] sm:$0xff]  ;;  %v935_v1 = vld [vmem:[#allocation5 + $0x30] sm:$0xff]  ;;  %s1593_s3 = sld [smem:[#allocation37_spill]]  ;;  %s643_s26 = sshll.u32 %s1577_s12, 4  ;;  %s644_s26 = int_to_ptr.hbm [resolvable:$true] %s643_s26 }
  0x2e   :  { %213 = vmatpush.bf16.msra.mxu0 %v936_v0  ;;  %311 = vmatpush.bf16.msra.mxu2 %v936_v0  ;;  %v944_v2 = vld [vmem:[#allocation7 + $0x38] sm:$0xff]  ;;  %v943_v3 = vld [vmem:[#allocation7 + $0x30] sm:$0xff]  ;;  %v934_v4 = vld [vmem:[#allocation5 + $0x28] sm:$0xff]  ;;  %s1377_s28 = smov [#allocation14]   ;;  %s1378_s24 = smov [#allocation17]  }
  0x2f   :  { %296 = vmatpush.bf16.msra.mxu1 %v944_v2  ;;  %326 = vmatpush.bf16.msra.mxu3 %v944_v2  ;;  %v942_v5 = vld [vmem:[#allocation7 + $0x28] sm:$0xff]  ;;  %v933_v6 = vld [vmem:[#allocation5 + $0x20] sm:$0xff]  ;;  %v932_v8 = vld [vmem:[#allocation5 + $0x18] sm:$0xff]  ;;  %s641_s29 = sshll.u32 %s1377_s28, 4  ;;  %s663_s27 = sshll.u32 %s1378_s24, 4  ;;  %s642_s29 = int_to_ptr.vmem [resolvable:$true] %s641_s29  ;;  %s664_s27 = int_to_ptr.vmem [resolvable:$true] %s663_s27 }
  0x30   :  { %v941_v7 = vld [vmem:[#allocation7 + $0x20] sm:$0xff]  ;;  %v940_v9 = vld [vmem:[#allocation7 + $0x18] sm:$0xff]  ;;  %v931_v10 = vld [vmem:[#allocation5 + $0x10] sm:$0xff]  ;;  %s665_s20 = sshll.u32 %s1579_s14, 4  ;;  %s687_s9 = sshll.u32 %s1581_s16, 4  ;;  %s666_s20 = int_to_ptr.hbm [resolvable:$true] %s665_s20  ;;  %s688_s9 = int_to_ptr.hbm [resolvable:$true] %s687_s9 }
  0x31   :  { %v939_v11 = vld [vmem:[#allocation7 + $0x10] sm:$0xff]  ;;  %v930_v12 = vld [vmem:[#allocation5 + $0x8] sm:$0xff]  ;;  %v929_v13 = vld [vmem:[#allocation5] sm:$0xff]  ;;  %s1379_s25 = smov [#allocation20]   ;;  %s709_s23 = sshll.u32 %s1583_s18, 4  ;;  %s710_s23 = int_to_ptr.hbm [resolvable:$true] %s709_s23 }
  0x32   :  { %214 = vmatpush.bf16.msra.mxu0 %v935_v1  ;;  %312 = vmatpush.bf16.msra.mxu2 %v935_v1  ;;  %v952_v14 = vld [vmem:[#allocation8 + $0x38] sm:$0xff]  ;;  %v951_v16 = vld [vmem:[#allocation8 + $0x30] sm:$0xff]  ;;  %v950_v17 = vld [vmem:[#allocation8 + $0x28] sm:$0xff]  ;;  %s685_s12 = sshll.u32 %s1379_s25, 4  ;;  %s632_s21 = sshll.u32 %s1576_s11, 4  ;;  %s686_s12 = int_to_ptr.vmem [resolvable:$true] %s685_s12  ;;  %s633_s21 = int_to_ptr.hbm [resolvable:$true] %s632_s21 }
  0x33   :  { %297 = vmatpush.bf16.msra.mxu1 %v943_v3  ;;  %327 = vmatpush.bf16.msra.mxu3 %v943_v3  ;;  %v144_v15 = vld [vmem:[#allocation2] sm:$0xf]  ;;  %v949_v18 = vld [vmem:[#allocation8 + $0x20] sm:$0xff]  ;;  %v947_v20 = vld [vmem:[#allocation8 + $0x10] sm:$0xff]  ;;  %s1382_s22 = smov [#allocation16]   ;;  %s654_s28 = sshll.u32 %s1578_s13, 4  ;;  %s655_s28 = int_to_ptr.hbm [resolvable:$true] %s654_s28 }
  0x34   :  { %v948_v19 = vld [vmem:[#allocation8 + $0x18] sm:$0xff]  ;;  %v938_v21 = vld [vmem:[#allocation7 + $0x8] sm:$0xff]  ;;  %v937_v23 = vld [vmem:[#allocation7] sm:$0xff]  ;;  %s676_s24 = sshll.u32 %s1580_s15, 4  ;;  %s1384_s17 = smov [#allocation25]   ;;  %s677_s24 = int_to_ptr.hbm [resolvable:$true] %s676_s24 }
  0x35   :  { %v946_v22 = vld [vmem:[#allocation8 + $0x8] sm:$0xff]  ;;  %v945_v24 = vld [vmem:[#allocation8] sm:$0xff]  ;;  %v960_v25 = vld [vmem:[#allocation10 + $0x38] sm:$0xff]  ;;  %s718_s7 = sshll.u32 %s1384_s17, 4  ;;  %s1385_s13 = smov [#allocation22]   ;;  %s719_s7 = int_to_ptr.vmem [resolvable:$true] %s718_s7 }
  0x36   :  { %215 = vmatpush.bf16.msra.mxu0 %v934_v4  ;;  %313 = vmatpush.bf16.msra.mxu2 %v934_v4  ;;  %v968_v26 = vld [vmem:[#allocation11 + $0x38] sm:$0xff]  ;;  %v959_v27 = vld [vmem:[#allocation10 + $0x30] sm:$0xff]  ;;  %v958_v29 = vld [vmem:[#allocation10 + $0x28] sm:$0xff]  ;;  %s1594_s15 = sld [smem:[#allocation39_spill]] }
  0x37   :  { %298 = vmatpush.bf16.msra.mxu1 %v942_v5  ;;  %328 = vmatpush.bf16.msra.mxu3 %v942_v5  ;;  %v967_v28 = vld [vmem:[#allocation11 + $0x30] sm:$0xff]  ;;  %v966_v30 = vld [vmem:[#allocation11 + $0x28] sm:$0xff]  ;;  %v957_v31 = vld [vmem:[#allocation10 + $0x20] sm:$0xff] }
  0x38   :  { %v965_v32 = vld [vmem:[#allocation11 + $0x20] sm:$0xff]  ;;  %v956_v33 = vld [vmem:[#allocation10 + $0x18] sm:$0xff]  ;;  %v955_v35 = vld [vmem:[#allocation10 + $0x10] sm:$0xff] }
  0x39   :  { %v964_v34 = vld [vmem:[#allocation11 + $0x18] sm:$0xff]  ;;  %v963_v36 = vld [vmem:[#allocation11 + $0x10] sm:$0xff]  ;;  %v954_v43 = vld [vmem:[#allocation10 + $0x8] sm:$0xff] }
  0x3a   :  { %216 = vmatpush.bf16.msra.mxu0 %v933_v6  ;;  %314 = vmatpush.bf16.msra.mxu2 %v933_v6  ;;  %v986_v37 = vld [vmem:[%s1593_s3] ss:$0 sm:$0xff]  ;;  %v962_v44 = vld [vmem:[#allocation11 + $0x8] sm:$0xff]  ;;  %v953_v45 = vld [vmem:[#allocation10] sm:$0xff]  ;;  %s1380_s3 = smov [#allocation23]  }
  0x3b   :  { %299 = vmatpush.bf16.msra.mxu1 %v941_v7  ;;  %329 = vmatpush.bf16.msra.mxu3 %v941_v7  ;;  %v961_v46 = vld [vmem:[#allocation11] sm:$0xff]  ;;  %v987_v47 = vld [vmem:[%s1569_s4] ss:$0 sm:$0xff]  ;;  %s707_s30 = sshll.u32 %s1380_s3, 4  ;;  %s708_s30 = int_to_ptr.vmem [resolvable:$true] %s707_s30 }
  0x3c   :  { %v988_v48 = vld [vmem:[%s1571_s6] ss:$0 sm:$0xff]  ;;  %s1381_s6 = smov [#allocation13]   ;;  %s698_s3 = sshll.u32 %s1594_s15, 4  ;;  %s699_s3 = int_to_ptr.hbm [resolvable:$true] %s698_s3 }
  0x3d   :  { %v1531_v59 = vld [vmem:[%s1573_s8] ss:$0 sm:$0xff]  ;;  %s630_s16 = sshll.u32 %s1381_s6, 4  ;;  %s652_s8 = sshll.u32 %s1382_s22, 4  ;;  %s631_s16 = int_to_ptr.vmem [resolvable:$true] %s630_s16  ;;  %s653_s8 = int_to_ptr.vmem [resolvable:$true] %s652_s8 }
  0x3e   :  { %217 = vmatpush.bf16.msra.mxu0 %v932_v8  ;;  %315 = vmatpush.bf16.msra.mxu2 %v932_v8  ;;  %v990_v60 = vld [vmem:[%s1575_s10] ss:$0 sm:$0xff] }
  0x3f   :  { %300 = vmatpush.bf16.msra.mxu1 %v940_v9  ;;  %330 = vmatpush.bf16.msra.mxu3 %v940_v9 }
  0x42   :  { %218 = vmatpush.bf16.msra.mxu0 %v931_v10  ;;  %316 = vmatpush.bf16.msra.mxu2 %v931_v10 }
  0x43   :  { %301 = vmatpush.bf16.msra.mxu1 %v939_v11  ;;  %331 = vmatpush.bf16.msra.mxu3 %v939_v11 }
  0x46   :  { %219 = vmatpush.bf16.msra.mxu0 %v930_v12  ;;  %317 = vmatpush.bf16.msra.mxu2 %v930_v12 }
  0x47   :  { %302 = vmatpush.bf16.msra.mxu1 %v938_v21  ;;  %332 = vmatpush.bf16.msra.mxu3 %v938_v21 }
  0x4a   :  { %220 = vmatpush.bf16.msra.mxu0 %v929_v13  ;;  %318 = vmatpush.bf16.msra.mxu2 %v929_v13 }
  0x4b   :  { %303 = vmatpush.bf16.msra.mxu1 %v937_v23  ;;  %333 = vmatpush.bf16.msra.mxu3 %v937_v23 }
  0x4d   :  { %221 = vmatmul.bf16.vlgmr.msra.gmra.mxu0 %v144_v15 }
  0x4e   :  { %412 = vmatpush.bf16.msrb.mxu0 %v952_v14  ;;  %510 = vmatpush.bf16.msrb.mxu2 %v952_v14 }
  0x4f   :  { %495 = vmatpush.bf16.msrb.mxu1 %v960_v25  ;;  %525 = vmatpush.bf16.msrb.mxu3 %v960_v25 }
  0x52   :  { %413 = vmatpush.bf16.msrb.mxu0 %v951_v16  ;;  %511 = vmatpush.bf16.msrb.mxu2 %v951_v16 }
  0x53   :  { %496 = vmatpush.bf16.msrb.mxu1 %v959_v27  ;;  %526 = vmatpush.bf16.msrb.mxu3 %v959_v27 }
  0x56   :  { %414 = vmatpush.bf16.msrb.mxu0 %v950_v17  ;;  %512 = vmatpush.bf16.msrb.mxu2 %v950_v17 }
  0x57   :  { %497 = vmatpush.bf16.msrb.mxu1 %v958_v29  ;;  %527 = vmatpush.bf16.msrb.mxu3 %v958_v29 }
  0x5a   :  { %415 = vmatpush.bf16.msrb.mxu0 %v949_v18  ;;  %513 = vmatpush.bf16.msrb.mxu2 %v949_v18 }
  0x5b   :  { %498 = vmatpush.bf16.msrb.mxu1 %v957_v31  ;;  %528 = vmatpush.bf16.msrb.mxu3 %v957_v31 }
  0x5e   :  { %416 = vmatpush.bf16.msrb.mxu0 %v948_v19  ;;  %514 = vmatpush.bf16.msrb.mxu2 %v948_v19 }
  0x5f   :  { %499 = vmatpush.bf16.msrb.mxu1 %v956_v33  ;;  %529 = vmatpush.bf16.msrb.mxu3 %v956_v33 }
  0x62   :  { %417 = vmatpush.bf16.msrb.mxu0 %v947_v20  ;;  %515 = vmatpush.bf16.msrb.mxu2 %v947_v20 }
  0x63   :  { %500 = vmatpush.bf16.msrb.mxu1 %v955_v35  ;;  %530 = vmatpush.bf16.msrb.mxu3 %v955_v35 }
  0x66   :  { %418 = vmatpush.bf16.msrb.mxu0 %v946_v22  ;;  %516 = vmatpush.bf16.msrb.mxu2 %v946_v22 }
  0x67   :  { %501 = vmatpush.bf16.msrb.mxu1 %v954_v43  ;;  %531 = vmatpush.bf16.msrb.mxu3 %v954_v43 }
  0x6a   :  { %419 = vmatpush.bf16.msrb.mxu0 %v945_v24  ;;  %517 = vmatpush.bf16.msrb.mxu2 %v945_v24 }
  0x6b   :  { %502 = vmatpush.bf16.msrb.mxu1 %v953_v45  ;;  %532 = vmatpush.bf16.msrb.mxu3 %v953_v45 }
  0x6e   :  { %611 = vmatpush.bf16.msra.mxu0 %v968_v26 }
  0x72   :  { %612 = vmatpush.bf16.msra.mxu0 %v967_v28 }
  0x76   :  { %613 = vmatpush.bf16.msra.mxu0 %v966_v30 }
  0x7a   :  { %614 = vmatpush.bf16.msra.mxu0 %v965_v32 }
  0x7e   :  { %615 = vmatpush.bf16.msra.mxu0 %v964_v34 }
  0x82   :  { %616 = vmatpush.bf16.msra.mxu0 %v963_v36 }
  0x86   :  { %617 = vmatpush.bf16.msra.mxu0 %v962_v44 }
  0x8a   :  { %618 = vmatpush.bf16.msra.mxu0 %v961_v46 }
  0xca   :  { %v222_v38 = vpop.f32.mrf.mxu0 }
  0xcb   :  { %v223_v39 = vadd.f32 %v986_v37, %v222_v38 }
  0xcd   :  { %v226_v40 = vmax.f32 %v223_v39, 0.0 }
  0xcf   :  { %341 = vst [vmem:[#allocation14] sm:$0xff] %v226_v40  ;;  %v227_v41 = vpack.c.bf16 %v226_v40, %v226_v40 }
  0xd0   :  { %646 = dma.vmem_to_hbm [thread:$0]  %s642_s29, 128, %s644_s26, [#allocation15]  }
  0xd1   :  { %304 = vmatmul.bf16.vlgmr.msra.gmra.mxu1 %v227_v41  ;;  %420 = vmatmul.bf16.vlgmr.msrb.gmra.mxu0 %v227_v41 }
  0xd2   :  { %v224_v42 = vpop.f32.mrf.mxu0 }
 0x14e   :  { %v305_v49 = vpop.f32.mrf.mxu1  ;;  %v421_v50 = vpop.f32.mrf.mxu0 }
 0x14f   :  { %v306_v51 = vadd.f32 %v987_v47, %v305_v49  ;;  %v422_v52 = vadd.f32 %v988_v48, %v421_v50 }
 0x151   :  { %v309_v53 = vmax.f32 %v306_v51, 0.0  ;;  %v425_v54 = vmax.f32 %v422_v52, 0.0 }
 0x153   :  { %343 = vst [vmem:[#allocation17] sm:$0xff] %v309_v53  ;;  %v426_v55 = vpack.c.bf16 %v425_v54, %v425_v54  ;;  %v310_v56 = vpack.c.bf16 %v309_v53, %v309_v53 }
 0x154   :  { %540 = vst [vmem:[#allocation20] sm:$0xff] %v425_v54  ;;  %668 = dma.vmem_to_hbm [thread:$0]  %s664_s27, 128, %s666_s20, [#allocation18]  }
 0x155   :  { %319 = vmatmul.bf16.vlgmr.msra.gmra.mxu2 %v310_v56  ;;  %503 = vmatmul.bf16.vlgmr.msrb.gmra.mxu1 %v426_v55  ;;  %690 = dma.vmem_to_hbm [thread:$0]  %s686_s12, 128, %s688_s9, [#allocation21]  }
 0x156   :  { %619 = vmatmul.bf16.vlgmr.msra.gmra.mxu0 %v426_v55  ;;  %v307_v57 = vpop.f32.mrf.mxu1  ;;  %v423_v58 = vpop.f32.mrf.mxu0  ;;  %s1383_s27 = smov [#allocation19]   ;;  %s720_s20 = sshll.u32 %s1584_s19, 4  ;;  %s721_s20 = int_to_ptr.hbm [resolvable:$true] %s720_s20 }
 0x157   :  { %s674_s11 = sshll.u32 %s1383_s27, 4  ;;  %s696_s9 = sshll.u32 %s1385_s13, 4  ;;  %s675_s11 = int_to_ptr.vmem [resolvable:$true] %s674_s11  ;;  %s697_s9 = int_to_ptr.vmem [resolvable:$true] %s696_s9 }
 0x1d2   :  { %v504_v61 = vpop.f32.mrf.mxu1 }
 0x1d3   :  { %v505_v62 = vadd.f32 %v1531_v59, %v504_v61  ;;  %v620_v63 = vpop.f32.mrf.mxu0 }
 0x1d4   :  { %v621_v0 = vadd.f32 %v990_v60, %v620_v63 }
 0x1d5   :  { %v508_v1 = vmax.f32 %v505_v62, 0.0 }
 0x1d6   :  { %624 = vst [vmem:[#allocation25] sm:$0xff] %v621_v0 }
 0x1d7   :  { %v509_v2 = vpack.c.bf16 %v508_v1, %v508_v1  ;;  %542 = vst [vmem:[#allocation23] sm:$0xff] %v508_v1 }
 0x1d8   :  { %v320_v3 = vpop.f32.mrf.mxu2  ;;  %712 = dma.vmem_to_hbm [thread:$0]  %s708_s30, 128, %s710_s23, [#allocation24]  }
 0x1d9   :  { %v321_v4 = vadd.f32 %v986_v37, %v320_v3  ;;  %518 = vmatmul.bf16.vlgmr.msrb.gmra.mxu2 %v509_v2  ;;  %723 = dma.vmem_to_hbm [thread:$0]  %s719_s7, 128, %s721_s20, [#allocation24]  }
 0x1da   :  { %v506_v5 = vpop.f32.mrf.mxu1 }
 0x1db   :  { %v324_v6 = vmax.f32 %v321_v4, 0.0  ;;  %v622_v7 = vpop.f32.mrf.mxu0 }
 0x1dd   :  { %340 = vst [vmem:[#allocation13] sm:$0xff] %v324_v6  ;;  %v325_v8 = vpack.c.bf16 %v324_v6, %v324_v6 }
 0x1de   :  { %635 = dma.vmem_to_hbm [thread:$0]  %s631_s16, 128, %s633_s21, [#allocation4]  }
 0x1df   :  { %334 = vmatmul.bf16.vlgmr.msra.gmra.mxu3 %v325_v8 }
 0x1e0   :  { %v322_v9 = vpop.f32.mrf.mxu2 }
 0x25c   :  { %v519_v10 = vpop.f32.mrf.mxu2 }
 0x25d   :  { %v520_v11 = vadd.f32 %v988_v48, %v519_v10 }
 0x25f   :  { %v523_v12 = vmax.f32 %v520_v11, 0.0 }
 0x261   :  { %v524_v13 = vpack.c.bf16 %v523_v12, %v523_v12  ;;  %539 = vst [vmem:[#allocation19] sm:$0xff] %v523_v12 }
 0x262   :  { %v335_v14 = vpop.f32.mrf.mxu3  ;;  %679 = dma.vmem_to_hbm [thread:$0]  %s675_s11, 128, %s677_s24, [#allocation18]  }
 0x263   :  { %v336_v15 = vadd.f32 %v987_v47, %v335_v14  ;;  %533 = vmatmul.bf16.vlgmr.msrb.gmra.mxu3 %v524_v13 }
 0x264   :  { %v521_v16 = vpop.f32.mrf.mxu2 }
 0x265   :  { %v339_v17 = vmax.f32 %v336_v15, 0.0 }
 0x267   :  { %342 = vst [vmem:[#allocation16] sm:$0xff] %v339_v17 }
 0x268   :  { %657 = dma.vmem_to_hbm [thread:$0]  %s653_s8, 128, %s655_s28, [#allocation15]  }
 0x26a   :  { %v337_v18 = vpop.f32.mrf.mxu3 }
 0x2e6   :  { %v534_v19 = vpop.f32.mrf.mxu3 }
 0x2e7   :  { %v535_v20 = vadd.f32 %v1531_v59, %v534_v19 }
 0x2e9   :  { %v538_v21 = vmax.f32 %v535_v20, 0.0 }
 0x2eb   :  { %541 = vst [vmem:[#allocation22] sm:$0xff] %v538_v21 }
 0x2ec   :  { %701 = dma.vmem_to_hbm [thread:$0]  %s697_s9, 128, %s699_s3, [#allocation21]  }
 0x2ee   :  { %v536_v22 = vpop.f32.mrf.mxu3 }
 0x2ef   :  { %1359 = dma.done.wait [#allocation4], 128  }
 0x2f0   :  { %1360 = vsyncadd [#allocation4], 4294967168 }
 0x2f1   :  { %1361 = dma.done.wait [#allocation15], 256  }
 0x2f2   :  { %1362 = vsyncadd [#allocation15], 4294967040 }
 0x2f3   :  { %1363 = dma.done.wait [#allocation18], 256  }
 0x2f4   :  { %1364 = vsyncadd [#allocation18], 4294967040 }
 0x2f5   :  { %1365 = dma.done.wait [#allocation21], 256  }
 0x2f6   :  { %1366 = vsyncadd [#allocation21], 4294967040 }
 0x2f7   :  { %1367 = dma.done.wait [#allocation24], 256  }
 0x2f8   :  { %1368 = vsyncadd [#allocation24], 4294967040 }
 0x2f9   :  { %760 = vsyncpa [#allocation3], 1 }
 0x2fa   :  { %761 = vsyncpa [#allocation6], 1 }
 0x2fb   :  { %762 = vsyncpa [#allocation9], 1 }
 0x2fc   :  { %763 = vsyncpa [#allocation12], 1 }
 0x2fd   :  { %764 = vsyncpa [#allocation4], 1 }
 0x2fe   :  { %765 = vsyncpa [#allocation15], 1 }
 0x2ff   :  { %766 = vsyncpa [#allocation18], 1 }
 0x300   :  { %767 = vsyncpa [#allocation21], 1 }
 0x301   :  { %768 = vsyncpa [#allocation24], 1 }

</bundles_post_ra>
